<compile_context>
chip_gen: v6e
topology: v6e:2x2x1
jax: 0.10.0
libtpu: 0.0.40
codegen_flags: <defaults>
</compile_context>

<pallas_src>
import functools
import math

import jax
import jax.numpy as jnp
from jax.experimental import pallas as pl
from jax.experimental.pallas import tpu as pltpu


def _pick_tile(n, target, quantum):
    """Largest tile <= target that divides n and is a multiple of `quantum`;
    falls back to the full extent (a full-extent block dim is always legal)."""
    if n <= target:
        return n
    t = (target // quantum) * quantum
    while t >= quantum:
        if n % t == 0:
            return t
        t -= quantum
    return n


def _flash_sdpa_kernel(*refs, heads_num, d_k, scale, has_mask, compute_dtype):
    """One (batch, q-tile, kv-tile) grid step of flash SDPA for all heads."""
    if has_mask:
        (q_ref, k_ref, v_ref, mask_ref, o_ref,
         m_ref, l_ref, acc_ref, qs_ref) = refs
    else:
        (q_ref, k_ref, v_ref, o_ref,
         m_ref, l_ref, acc_ref, qs_ref) = refs
        mask_ref = None

    kv_idx = pl.program_id(2)

    @pl.when(kv_idx == 0)
    def _init():
        m_ref[...] = jnp.full_like(m_ref, -jnp.inf)
        l_ref[...] = jnp.zeros_like(l_ref)
        acc_ref[...] = jnp.zeros_like(acc_ref)
        # Fold 1/sqrt(d_k) into Q once per q-tile (the Q block is resident
        # across all kv steps) instead of a per-step (tq, d_model) rescale.
        qs_ref[...] = q_ref[...] * scale

    q = qs_ref[...]            # (tq, d_model) compute dtype, pre-scaled
    k = k_ref[...]             # (d_model, tk) compute dtype (K pre-transposed)
    v = v_ref[...]             # (tk, d_model) compute dtype
    acc = acc_ref[...]         # (tq, d_model) f32 — single full-width load
    if has_mask:
        mask = mask_ref[...]   # (tq, tk) or (1, tk), multiplicative

    new_acc_parts = []
    for h in range(heads_num):   # static unroll: lane/sublane slices stay static
        lo = h * d_k
        # (tq, d_k) x (d_k, tk): contraction is Q-lanes vs K-sublanes, so the
        # MXU RHS needs no per-head repack / transpose.
        s = jnp.dot(q[:, lo:lo + d_k], k[lo:lo + d_k, :],
                    preferred_element_type=jnp.float32)         # (tq, tk) f32
        if has_mask:
            s = s * mask          # PyTorch module semantics: multiplicative mask

        # Online softmax update; statistics stay in f32.
        m_prev = m_ref[h]                                        # (tq, 1) f32
        m_new = jnp.maximum(m_prev, jnp.max(s, axis=-1, keepdims=True))
        alpha = jnp.exp(m_prev - m_new)                          # (tq, 1) f32
        # exp in the compute dtype: bf16 EUP path on v6e/v7x, and p feeds the
        # bf16 MXU for the PV matmul anyway.
        p = jnp.exp((s - m_new).astype(compute_dtype))           # (tq, tk)
        # (If a bundle dump shows the XLU as the binding slot, this row-sum
        # can be folded into the PV matmul via a ones column appended to V.)
        l_ref[h] = alpha * l_ref[h] + jnp.sum(
            p.astype(jnp.float32), axis=-1, keepdims=True)
        m_ref[h] = m_new

        pv = jnp.dot(p, v[:, lo:lo + d_k],
                     preferred_element_type=jnp.float32)         # (tq, d_k) f32
        new_acc_parts.append(alpha * acc[:, lo:lo + d_k] + pv)

    # Single lane-dense, unmasked accumulator store per kv step.
    acc_ref[...] = jnp.concatenate(new_acc_parts, axis=-1)

    @pl.when(kv_idx == pl.num_programs(2) - 1)
    def _finalize():
        acc_fin = acc_ref[...]
        out_parts = []
        for h in range(heads_num):
            lo = h * d_k
            # Exact reciprocal: runs once per q tile, approx buys nothing here.
            out_parts.append(acc_fin[:, lo:lo + d_k] * (1.0 / l_ref[h]))
        o_ref[...] = jnp.concatenate(out_parts, axis=-1).astype(o_ref.dtype)


def scaled_dot_product_attention(queries, keys, values, mask=None, *,
                                 d_k=32, heads_num=4,
                                 q_tile=512, kv_tile=512,
                                 compute_dtype=jnp.bfloat16):
    """SDPA for all heads at once (flash-attention Pallas kernel).

    Args:
      queries: (bs, M, d_model) with d_model == heads_num * d_k
      keys:    (bs, N, d_model)
      values:  (bs, N, d_model)
      mask:    optional multiplicative mask, broadcastable to (bs, M, N)
               (e.g. (bs, 1, M, N) / (bs, 1, 1, N) sequence masks).
      compute_dtype: MXU/exp operand dtype (default bf16; pass jnp.float32 or
               None for bit-closer numerics).  Statistics/accumulation are f32.
    Returns:
      (bs, heads_num, M, d_k)
    """
    bs, M, d_model = queries.shape
    N = keys.shape[1]
    assert d_model == heads_num * d_k
    assert keys.shape == (bs, N, d_model) and values.shape == (bs, N, d_model)

    out_dtype = queries.dtype
    cdt = jnp.dtype(compute_dtype) if compute_dtype is not None else jnp.dtype(out_dtype)

    # bf16 operands halve Q/K/V HBM bytes and run the bf16 MXUs at full rate.
    q_in = queries.astype(cdt)
    # Pre-transpose K once in HBM: amortized over the M/tq K re-streams.
    k_in = jnp.swapaxes(keys, 1, 2).astype(cdt)          # (bs, d_model, N)
    v_in = values.astype(cdt)

    has_mask = mask is not None
    mask_row_bcast = False
    if has_mask:
        m = jnp.asarray(mask)
        if m.ndim == 4:
            # The module applies the same mask to every head; a per-head mask
            # would need a head axis in the mask BlockSpec.
            assert m.shape[1] == 1, "per-head masks are not supported"
            m = m[:, 0]
        if m.ndim == 1:
            m = m[None, None, :]
        elif m.ndim == 2:
            m = m[None, :, :]
        assert m.ndim == 3
        mask_row_bcast = (m.shape[1] == 1)
        # Multiplicative 0/1 masks are exact in the compute dtype; a
        # query-independent mask streams as a tiny (bs, 1, N) array.
        if mask_row_bcast:
            mask_in = jnp.broadcast_to(m, (bs, 1, N)).astype(cdt)
        else:
            mask_in = jnp.broadcast_to(m, (bs, M, N)).astype(cdt)

    # --- tile selection ------------------------------------------------------
    tq = _pick_tile(M, q_tile, 16)     # sublane axis (16 = bf16 packing quantum)
    tk = _pick_tile(N, kv_tile, 128)   # lane axis of s/p and PV contraction depth

    # v7x has two TensorCores: keep the "parallel" grid extent >= 2 if possible.
    if bs * (M // tq) < 2:
        tq2 = _pick_tile(M, max(M // 2, 16), 16)
        if M // tq2 >= 2:
            tq = tq2

    # Rough VMEM budget (2x-buffered blocks + scratch + f32 intermediates)
    # kept under v7x's 64 MiB with headroom; v5e/v6e (128 MiB) are looser.
    def vmem_estimate(tq_, tk_):
        cb = cdt.itemsize
        blocks = 2 * (2 * tq_ * d_model + 2 * tk_ * d_model) * cb    # Q,O,K,V
        if has_mask:
            blocks += 2 * (1 if mask_row_bcast else tq_) * tk_ * cb
        scratch = (2 * heads_num * tq_ + tq_ * d_model) * 4 + tq_ * d_model * cb
        interm = 4 * tq_ * tk_ * 4                                   # s/p working set
        return blocks + scratch + interm

    vmem_budget = 40 * 1024 * 1024
    for _ in range(16):
        if vmem_estimate(tq, tk) <= vmem_budget:
            break
        if tk > 128:
            new_tk = _pick_tile(N, tk // 2, 128)
            if new_tk < tk:
                tk = new_tk
                continue
        if tq > 16:
            new_tq = _pick_tile(M, tq // 2, 16)
            if new_tq < tq:
                tq = new_tq
                continue
        break

    scale = 1.0 / math.sqrt(d_k)
    kernel = functools.partial(_flash_sdpa_kernel, heads_num=heads_num, d_k=d_k,
                               scale=scale, has_mask=has_mask, compute_dtype=cdt)

    sq = pl.Squeezed()
    grid = (bs, M // tq, N // tk)

    in_specs = [
        pl.BlockSpec((sq, tq, d_model), lambda b, qi, ki: (b, qi, 0)),   # Q
        pl.BlockSpec((sq, d_model, tk), lambda b, qi, ki: (b, 0, ki)),   # K^T
        pl.BlockSpec((sq, tk, d_model), lambda b, qi, ki: (b, ki, 0)),   # V
    ]
    args = [q_in, k_in, v_in]
    if has_mask:
        if mask_row_bcast:
            in_specs.append(pl.BlockSpec((sq, 1, tk), lambda b, qi, ki: (b, 0, ki)))
        else:
            in_specs.append(pl.BlockSpec((sq, tq, tk), lambda b, qi, ki: (b, qi, ki)))
        args.append(mask_in)

    out_flat = pl.pallas_call(
        kernel,
        out_shape=jax.ShapeDtypeStruct((bs, M, d_model), out_dtype),
        grid_spec=pltpu.PrefetchScalarGridSpec(
            num_scalar_prefetch=0,
            grid=grid,
            in_specs=in_specs,
            out_specs=pl.BlockSpec((sq, tq, d_model), lambda b, qi, ki: (b, qi, 0)),
            scratch_shapes=[
                pltpu.VMEM((heads_num, tq, 1), jnp.float32),   # running row-max
                pltpu.VMEM((heads_num, tq, 1), jnp.float32),   # running row-sum
                pltpu.VMEM((tq, d_model), jnp.float32),        # f32 accumulator
                pltpu.VMEM((tq, d_model), cdt),                # pre-scaled Q
            ],
        ),
        compiler_params=pltpu.CompilerParams(
            dimension_semantics=("parallel", "parallel", "arbitrary"),
            vmem_limit_bytes=48 * 1024 * 1024,
        ),
    )(*args)

    # Layout glue: lane-dense (bs, M, d_model) output -> module's (bs, H, M, d_k).
    return out_flat.reshape(bs, M, heads_num, d_k).transpose(0, 2, 1, 3)


def _reference(queries, keys, values, mask, d_k, heads_num):
    bs, M, _ = queries.shape
    N = keys.shape[1]
    q = queries.reshape(bs, M, heads_num, d_k).transpose(0, 2, 1, 3)
    k = keys.reshape(bs, N, heads_num, d_k).transpose(0, 2, 1, 3)
    v = values.reshape(bs, N, heads_num, d_k).transpose(0, 2, 1, 3)
    scores = jnp.einsum("bhmd,bhnd->bhmn",
                        q.astype(jnp.float32), k.astype(jnp.float32)) / math.sqrt(d_k)
    if mask is not None:
        scores = scores * jnp.asarray(mask, jnp.float32)
    w = jax.nn.softmax(scores, axis=-1)
    return jnp.einsum("bhmn,bhnd->bhmd", w, v.astype(jnp.float32))


if __name__ == "__main__":
    # Small shapes consistent with the module: d_k=32, heads=4 -> d_model=128.
    bs, M, N = 2, 8, 8
    d_k, heads_num = 32, 4
    d_model = d_k * heads_num

    key = jax.random.PRNGKey(0)
    kq, kk, kv_ = jax.random.split(key, 3)
    queries = jax.random.normal(kq, (bs, M, d_model), dtype=jnp.float32)
    keys_ = jax.random.normal(kk, (bs, N, d_model), dtype=jnp.float32)
    values = jax.random.normal(kv_, (bs, N, d_model), dtype=jnp.float32)

    ref = _reference(queries, keys_, values, None, d_k, heads_num)

    # 1) default bf16 MXU path, no mask (no mask DMA at all)
    out = jax.block_until_ready(scaled_dot_product_attention(
        queries, keys_, values, mask=None, d_k=d_k, heads_num=heads_num))
    assert out.shape == (bs, heads_num, M, d_k)
    assert jnp.allclose(out, ref, atol=5e-2, rtol=5e-2), \
        float(jnp.max(jnp.abs(out - ref)))

    # 2) f32 compute path (tighter numerics, exact reciprocal in finalize)
    out32 = jax.block_until_ready(scaled_dot_product_attention(
        queries, keys_, values, mask=None, d_k=d_k, heads_num=heads_num,
        compute_dtype=jnp.float32))
    assert jnp.allclose(out32, ref, atol=2e-3, rtol=2e-3), \
        float(jnp.max(jnp.abs(out32 - ref)))

    # 3) head-broadcast multiplicative sequence mask (bs,1,1,N)
    #    -> cheap (bs,1,N) mask stream inside the kernel
    lens = jnp.array([N, N // 2])
    mask_seq = (jnp.arange(N)[None, None, None, :] <
                lens[:, None, None, None]).astype(jnp.float32)
    ref_m = _reference(queries, keys_, values, mask_seq, d_k, heads_num)
    out_m = jax.block_until_ready(scaled_dot_product_attention(
        queries, keys_, values, mask=mask_seq, d_k=d_k, heads_num=heads_num))
    assert out_m.shape == (bs, heads_num, M, d_k)
    assert jnp.allclose(out_m, ref_m, atol=5e-2, rtol=5e-2), \
        float(jnp.max(jnp.abs(out_m - ref_m)))

    # 4) query-dependent (bs,1,M,N) mask exercises the (tq,tk) mask path
    causal = (jnp.arange(N)[None, :] <= jnp.arange(M)[:, None]).astype(jnp.float32)
    mask_full = jnp.broadcast_to(causal[None, None], (bs, 1, M, N))
    ref_c = _reference(queries, keys_, values, mask_full, d_k, heads_num)
    out_c = jax.block_until_ready(scaled_dot_product_attention(
        queries, keys_, values, mask=mask_full, d_k=d_k, heads_num=heads_num))
    assert jnp.allclose(out_c, ref_c, atol=5e-2, rtol=5e-2), \
        float(jnp.max(jnp.abs(out_c - ref_c)))

    print("KERNEL_OK")
</pallas_src>

<mosaic_0001>
module attributes {stable_mosaic.version = 11 : i64} {
  func.func @_flash_sdpa_kernel(%arg0: i32, %arg1: i32, %arg2: i32, %arg3: memref<1x8x128xbf16, #tpu.memory_space<vmem>>, %arg4: memref<1x128x8xbf16, #tpu.memory_space<vmem>>, %arg5: memref<1x8x128xbf16, #tpu.memory_space<vmem>>, %arg6: memref<1x8x128xf32, #tpu.memory_space<vmem>>, %arg7: memref<4x8x1xf32, #tpu.memory_space<vmem>>, %arg8: memref<4x8x1xf32, #tpu.memory_space<vmem>>, %arg9: memref<8x128xf32, #tpu.memory_space<vmem>>, %arg10: memref<8x128xbf16, #tpu.memory_space<vmem>>) attributes {dimension_semantics = [#tpu.dimension_semantics<parallel>, #tpu.dimension_semantics<parallel>, #tpu.dimension_semantics<arbitrary>], iteration_bounds = array<i64: 2, 1, 1>, scalar_prefetch = 0 : i64, scratch_operands = 4 : i64, tpu.core_type = #tpu.core_type<tc>, window_params = [{transform_indices = @transform_0, window_bounds = array<i64: 1, 8, 128>}, {transform_indices = @transform_1, window_bounds = array<i64: 1, 128, 8>}, {transform_indices = @transform_2, window_bounds = array<i64: 1, 8, 128>}, {transform_indices = @transform_3, window_bounds = array<i64: 1, 8, 128>}]} {
    %c0_i32 = arith.constant 0 : i32
    %0 = arith.cmpi eq, %arg2, %c0_i32 : i32
    %1 = arith.extui %0 : i1 to i32
    %c0_i32_0 = arith.constant 0 : i32
    %2 = arith.cmpi ne, %1, %c0_i32_0 : i32
    scf.if %2 {
      %cst_74 = arith.constant 0xFF800000 : f32
      %146 = vector.broadcast %cst_74 : f32 to vector<4x8x1xf32>
      %c0_75 = arith.constant 0 : index
      %c0_76 = arith.constant 0 : index
      %c0_77 = arith.constant 0 : index
      %147 = vector.load %arg7[%c0_75, %c0_76, %c0_77] : memref<4x8x1xf32, #tpu.memory_space<vmem>>, vector<4x8x1xf32>
      tpu.vector_store %arg7[%c0_75, %c0_76, %c0_77], %146 {strides = array<i32>} : memref<4x8x1xf32, #tpu.memory_space<vmem>>, vector<4x8x1xf32>,
      %cst_78 = arith.constant 0.000000e+00 : f32
      %148 = vector.broadcast %cst_78 : f32 to vector<4x8x1xf32>
      %c0_79 = arith.constant 0 : index
      %c0_80 = arith.constant 0 : index
      %c0_81 = arith.constant 0 : index
      %149 = vector.load %arg8[%c0_79, %c0_80, %c0_81] : memref<4x8x1xf32, #tpu.memory_space<vmem>>, vector<4x8x1xf32>
      tpu.vector_store %arg8[%c0_79, %c0_80, %c0_81], %148 {strides = array<i32>} : memref<4x8x1xf32, #tpu.memory_space<vmem>>, vector<4x8x1xf32>,
      %cst_82 = arith.constant 0.000000e+00 : f32
      %150 = vector.broadcast %cst_82 : f32 to vector<8x128xf32>
      %c0_83 = arith.constant 0 : index
      %c0_84 = arith.constant 0 : index
      %151 = vector.load %arg9[%c0_83, %c0_84] : memref<8x128xf32, #tpu.memory_space<vmem>>, vector<8x128xf32>
      tpu.vector_store %arg9[%c0_83, %c0_84], %150 {strides = array<i32>} : memref<8x128xf32, #tpu.memory_space<vmem>>, vector<8x128xf32>,
      %c0_85 = arith.constant 0 : index
      %c0_86 = arith.constant 0 : index
      %c0_87 = arith.constant 0 : index
      %152 = vector.load %arg3[%c0_85, %c0_86, %c0_87] : memref<1x8x128xbf16, #tpu.memory_space<vmem>>, vector<1x8x128xbf16>
      %153 = vector.shape_cast %152 : vector<1x8x128xbf16> to vector<8x128xbf16>
      %cst_88 = arith.constant 1.767580e-01 : bf16
      %154 = vector.broadcast %cst_88 : bf16 to vector<8x128xbf16>
      %155 = arith.mulf %153, %154 : vector<8x128xbf16>
      %c0_89 = arith.constant 0 : index
      %c0_90 = arith.constant 0 : index
      %156 = vector.load %arg10[%c0_89, %c0_90] : memref<8x128xbf16, #tpu.memory_space<vmem>>, vector<8x128xbf16>
      tpu.vector_store %arg10[%c0_89, %c0_90], %155 {strides = array<i32>} : memref<8x128xbf16, #tpu.memory_space<vmem>>, vector<8x128xbf16>,
    } else {
    }
    %c0 = arith.constant 0 : index
    %c0_1 = arith.constant 0 : index
    %3 = vector.load %arg10[%c0, %c0_1] : memref<8x128xbf16, #tpu.memory_space<vmem>>, vector<8x128xbf16>
    %c0_2 = arith.constant 0 : index
    %c0_3 = arith.constant 0 : index
    %c0_4 = arith.constant 0 : index
    %4 = vector.load %arg4[%c0_2, %c0_3, %c0_4] : memref<1x128x8xbf16, #tpu.memory_space<vmem>>, vector<1x128x8xbf16>
    %5 = vector.shape_cast %4 : vector<1x128x8xbf16> to vector<128x8xbf16>
    %c0_5 = arith.constant 0 : index
    %c0_6 = arith.constant 0 : index
    %c0_7 = arith.constant 0 : index
    %6 = vector.load %arg5[%c0_5, %c0_6, %c0_7] : memref<1x8x128xbf16, #tpu.memory_space<vmem>>, vector<1x8x128xbf16>
    %7 = vector.shape_cast %6 : vector<1x8x128xbf16> to vector<8x128xbf16>
    %c0_8 = arith.constant 0 : index
    %c0_9 = arith.constant 0 : index
    %8 = vector.load %arg9[%c0_8, %c0_9] : memref<8x128xf32, #tpu.memory_space<vmem>>, vector<8x128xf32>
    %9 = vector.extract_strided_slice %3 {offsets = [0, 0], sizes = [8, 32], strides = [1, 1]} : vector<8x128xbf16> to vector<8x32xbf16>
    %10 = vector.extract_strided_slice %5 {offsets = [0, 0], sizes = [32, 8], strides = [1, 1]} : vector<128x8xbf16> to vector<32x8xbf16>
    %cst = arith.constant dense<0.000000e+00> : vector<8x8xf32>
    %11 = tpu.matmul %9, %10, %cst {dimension_numbers = #tpu.dot_dimension_numbers<[1], [0], [0], [1], [0, 0, 1, 1], [], []>} : vector<8x32xbf16>, vector<32x8xbf16>, vector<8x8xf32> -> vector<8x8xf32>
    %c0_10 = arith.constant 0 : index
    %c0_11 = arith.constant 0 : index
    %c0_12 = arith.constant 0 : index
    %12 = vector.load %arg7[%c0_10, %c0_11, %c0_12] : memref<4x8x1xf32, #tpu.memory_space<vmem>>, vector<1x8x1xf32>
    %13 = vector.shape_cast %12 : vector<1x8x1xf32> to vector<8x1xf32>
    %cst_13 = arith.constant dense<0xFF800000> : vector<8xf32>
    %14 = vector.multi_reduction <maximumf>, %11, %cst_13 [1] : vector<8x8xf32> to vector<8xf32>
    %15 = vector.shape_cast %14 : vector<8xf32> to vector<8x1xf32>
    %16 = arith.maximumf %13, %15 : vector<8x1xf32>
    %17 = arith.subf %13, %16 : vector<8x1xf32>
    %18 = math.exp %17 : vector<8x1xf32>
    %19 = vector.broadcast %16 : vector<8x1xf32> to vector<8x8xf32>
    %20 = arith.subf %11, %19 : vector<8x8xf32>
    %21 = arith.truncf %20 : vector<8x8xf32> to vector<8x8xbf16>
    %22 = math.exp %21 : vector<8x8xbf16>
    %c0_14 = arith.constant 0 : index
    %c0_15 = arith.constant 0 : index
    %c0_16 = arith.constant 0 : index
    %23 = vector.load %arg8[%c0_14, %c0_15, %c0_16] : memref<4x8x1xf32, #tpu.memory_space<vmem>>, vector<1x8x1xf32>
    %24 = vector.shape_cast %23 : vector<1x8x1xf32> to vector<8x1xf32>
    %25 = arith.mulf %18, %24 : vector<8x1xf32>
    %26 = arith.extf %22 : vector<8x8xbf16> to vector<8x8xf32>
    %cst_17 = arith.constant dense<0.000000e+00> : vector<8xf32>
    %27 = vector.multi_reduction <add>, %26, %cst_17 [1] : vector<8x8xf32> to vector<8xf32>
    %28 = vector.shape_cast %27 : vector<8xf32> to vector<8x1xf32>
    %29 = arith.addf %25, %28 : vector<8x1xf32>
    %c0_18 = arith.constant 0 : index
    %c0_19 = arith.constant 0 : index
    %c0_20 = arith.constant 0 : index
    %30 = vector.load %arg8[%c0_18, %c0_19, %c0_20] : memref<4x8x1xf32, #tpu.memory_space<vmem>>, vector<1x8x1xf32>
    %31 = vector.shape_cast %30 : vector<1x8x1xf32> to vector<8x1xf32>
    %32 = vector.shape_cast %29 : vector<8x1xf32> to vector<1x8x1xf32>
    tpu.vector_store %arg8[%c0_18, %c0_19, %c0_20], %32 {strides = array<i32>} : memref<4x8x1xf32, #tpu.memory_space<vmem>>, vector<1x8x1xf32>,
    %c0_21 = arith.constant 0 : index
    %c0_22 = arith.constant 0 : index
    %c0_23 = arith.constant 0 : index
    %33 = vector.load %arg7[%c0_21, %c0_22, %c0_23] : memref<4x8x1xf32, #tpu.memory_space<vmem>>, vector<1x8x1xf32>
    %34 = vector.shape_cast %33 : vector<1x8x1xf32> to vector<8x1xf32>
    %35 = vector.shape_cast %16 : vector<8x1xf32> to vector<1x8x1xf32>
    tpu.vector_store %arg7[%c0_21, %c0_22, %c0_23], %35 {strides = array<i32>} : memref<4x8x1xf32, #tpu.memory_space<vmem>>, vector<1x8x1xf32>,
    %36 = vector.extract_strided_slice %7 {offsets = [0, 0], sizes = [8, 32], strides = [1, 1]} : vector<8x128xbf16> to vector<8x32xbf16>
    %cst_24 = arith.constant dense<0.000000e+00> : vector<8x32xf32>
    %37 = tpu.matmul %22, %36, %cst_24 {dimension_numbers = #tpu.dot_dimension_numbers<[1], [0], [0], [1], [0, 0, 1, 1], [], []>} : vector<8x8xbf16>, vector<8x32xbf16>, vector<8x32xf32> -> vector<8x32xf32>
    %38 = vector.extract_strided_slice %8 {offsets = [0, 0], sizes = [8, 32], strides = [1, 1]} : vector<8x128xf32> to vector<8x32xf32>
    %39 = vector.broadcast %18 : vector<8x1xf32> to vector<8x32xf32>
    %40 = arith.mulf %39, %38 : vector<8x32xf32>
    %41 = arith.addf %40, %37 : vector<8x32xf32>
    %42 = vector.extract_strided_slice %3 {offsets = [0, 32], sizes = [8, 32], strides = [1, 1]} : vector<8x128xbf16> to vector<8x32xbf16>
    %43 = vector.extract_strided_slice %5 {offsets = [32, 0], sizes = [32, 8], strides = [1, 1]} : vector<128x8xbf16> to vector<32x8xbf16>
    %cst_25 = arith.constant dense<0.000000e+00> : vector<8x8xf32>
    %44 = tpu.matmul %42, %43, %cst_25 {dimension_numbers = #tpu.dot_dimension_numbers<[1], [0], [0], [1], [0, 0, 1, 1], [], []>} : vector<8x32xbf16>, vector<32x8xbf16>, vector<8x8xf32> -> vector<8x8xf32>
    %c1 = arith.constant 1 : index
    %c0_26 = arith.constant 0 : index
    %c0_27 = arith.constant 0 : index
    %45 = vector.load %arg7[%c1, %c0_26, %c0_27] : memref<4x8x1xf32, #tpu.memory_space<vmem>>, vector<1x8x1xf32>
    %46 = vector.shape_cast %45 : vector<1x8x1xf32> to vector<8x1xf32>
    %cst_28 = arith.constant dense<0xFF800000> : vector<8xf32>
    %47 = vector.multi_reduction <maximumf>, %44, %cst_28 [1] : vector<8x8xf32> to vector<8xf32>
    %48 = vector.shape_cast %47 : vector<8xf32> to vector<8x1xf32>
    %49 = arith.maximumf %46, %48 : vector<8x1xf32>
    %50 = arith.subf %46, %49 : vector<8x1xf32>
    %51 = math.exp %50 : vector<8x1xf32>
    %52 = vector.broadcast %49 : vector<8x1xf32> to vector<8x8xf32>
    %53 = arith.subf %44, %52 : vector<8x8xf32>
    %54 = arith.truncf %53 : vector<8x8xf32> to vector<8x8xbf16>
    %55 = math.exp %54 : vector<8x8xbf16>
    %c1_29 = arith.constant 1 : index
    %c0_30 = arith.constant 0 : index
    %c0_31 = arith.constant 0 : index
    %56 = vector.load %arg8[%c1_29, %c0_30, %c0_31] : memref<4x8x1xf32, #tpu.memory_space<vmem>>, vector<1x8x1xf32>
    %57 = vector.shape_cast %56 : vector<1x8x1xf32> to vector<8x1xf32>
    %58 = arith.mulf %51, %57 : vector<8x1xf32>
    %59 = arith.extf %55 : vector<8x8xbf16> to vector<8x8xf32>
    %cst_32 = arith.constant dense<0.000000e+00> : vector<8xf32>
    %60 = vector.multi_reduction <add>, %59, %cst_32 [1] : vector<8x8xf32> to vector<8xf32>
    %61 = vector.shape_cast %60 : vector<8xf32> to vector<8x1xf32>
    %62 = arith.addf %58, %61 : vector<8x1xf32>
    %c1_33 = arith.constant 1 : index
    %c0_34 = arith.constant 0 : index
    %c0_35 = arith.constant 0 : index
    %63 = vector.load %arg8[%c1_33, %c0_34, %c0_35] : memref<4x8x1xf32, #tpu.memory_space<vmem>>, vector<1x8x1xf32>
    %64 = vector.shape_cast %63 : vector<1x8x1xf32> to vector<8x1xf32>
    %65 = vector.shape_cast %62 : vector<8x1xf32> to vector<1x8x1xf32>
    tpu.vector_store %arg8[%c1_33, %c0_34, %c0_35], %65 {strides = array<i32>} : memref<4x8x1xf32, #tpu.memory_space<vmem>>, vector<1x8x1xf32>,
    %c1_36 = arith.constant 1 : index
    %c0_37 = arith.constant 0 : index
    %c0_38 = arith.constant 0 : index
    %66 = vector.load %arg7[%c1_36, %c0_37, %c0_38] : memref<4x8x1xf32, #tpu.memory_space<vmem>>, vector<1x8x1xf32>
    %67 = vector.shape_cast %66 : vector<1x8x1xf32> to vector<8x1xf32>
    %68 = vector.shape_cast %49 : vector<8x1xf32> to vector<1x8x1xf32>
    tpu.vector_store %arg7[%c1_36, %c0_37, %c0_38], %68 {strides = array<i32>} : memref<4x8x1xf32, #tpu.memory_space<vmem>>, vector<1x8x1xf32>,
    %69 = vector.extract_strided_slice %7 {offsets = [0, 32], sizes = [8, 32], strides = [1, 1]} : vector<8x128xbf16> to vector<8x32xbf16>
    %cst_39 = arith.constant dense<0.000000e+00> : vector<8x32xf32>
    %70 = tpu.matmul %55, %69, %cst_39 {dimension_numbers = #tpu.dot_dimension_numbers<[1], [0], [0], [1], [0, 0, 1, 1], [], []>} : vector<8x8xbf16>, vector<8x32xbf16>, vector<8x32xf32> -> vector<8x32xf32>
    %71 = vector.extract_strided_slice %8 {offsets = [0, 32], sizes = [8, 32], strides = [1, 1]} : vector<8x128xf32> to vector<8x32xf32>
    %72 = vector.broadcast %51 : vector<8x1xf32> to vector<8x32xf32>
    %73 = arith.mulf %72, %71 : vector<8x32xf32>
    %74 = arith.addf %73, %70 : vector<8x32xf32>
    %75 = vector.extract_strided_slice %3 {offsets = [0, 64], sizes = [8, 32], strides = [1, 1]} : vector<8x128xbf16> to vector<8x32xbf16>
    %76 = vector.extract_strided_slice %5 {offsets = [64, 0], sizes = [32, 8], strides = [1, 1]} : vector<128x8xbf16> to vector<32x8xbf16>
    %cst_40 = arith.constant dense<0.000000e+00> : vector<8x8xf32>
    %77 = tpu.matmul %75, %76, %cst_40 {dimension_numbers = #tpu.dot_dimension_numbers<[1], [0], [0], [1], [0, 0, 1, 1], [], []>} : vector<8x32xbf16>, vector<32x8xbf16>, vector<8x8xf32> -> vector<8x8xf32>
    %c2 = arith.constant 2 : index
    %c0_41 = arith.constant 0 : index
    %c0_42 = arith.constant 0 : index
    %78 = vector.load %arg7[%c2, %c0_41, %c0_42] : memref<4x8x1xf32, #tpu.memory_space<vmem>>, vector<1x8x1xf32>
    %79 = vector.shape_cast %78 : vector<1x8x1xf32> to vector<8x1xf32>
    %cst_43 = arith.constant dense<0xFF800000> : vector<8xf32>
    %80 = vector.multi_reduction <maximumf>, %77, %cst_43 [1] : vector<8x8xf32> to vector<8xf32>
    %81 = vector.shape_cast %80 : vector<8xf32> to vector<8x1xf32>
    %82 = arith.maximumf %79, %81 : vector<8x1xf32>
    %83 = arith.subf %79, %82 : vector<8x1xf32>
    %84 = math.exp %83 : vector<8x1xf32>
    %85 = vector.broadcast %82 : vector<8x1xf32> to vector<8x8xf32>
    %86 = arith.subf %77, %85 : vector<8x8xf32>
    %87 = arith.truncf %86 : vector<8x8xf32> to vector<8x8xbf16>
    %88 = math.exp %87 : vector<8x8xbf16>
    %c2_44 = arith.constant 2 : index
    %c0_45 = arith.constant 0 : index
    %c0_46 = arith.constant 0 : index
    %89 = vector.load %arg8[%c2_44, %c0_45, %c0_46] : memref<4x8x1xf32, #tpu.memory_space<vmem>>, vector<1x8x1xf32>
    %90 = vector.shape_cast %89 : vector<1x8x1xf32> to vector<8x1xf32>
    %91 = arith.mulf %84, %90 : vector<8x1xf32>
    %92 = arith.extf %88 : vector<8x8xbf16> to vector<8x8xf32>
    %cst_47 = arith.constant dense<0.000000e+00> : vector<8xf32>
    %93 = vector.multi_reduction <add>, %92, %cst_47 [1] : vector<8x8xf32> to vector<8xf32>
    %94 = vector.shape_cast %93 : vector<8xf32> to vector<8x1xf32>
    %95 = arith.addf %91, %94 : vector<8x1xf32>
    %c2_48 = arith.constant 2 : index
    %c0_49 = arith.constant 0 : index
    %c0_50 = arith.constant 0 : index
    %96 = vector.load %arg8[%c2_48, %c0_49, %c0_50] : memref<4x8x1xf32, #tpu.memory_space<vmem>>, vector<1x8x1xf32>
    %97 = vector.shape_cast %96 : vector<1x8x1xf32> to vector<8x1xf32>
    %98 = vector.shape_cast %95 : vector<8x1xf32> to vector<1x8x1xf32>
    tpu.vector_store %arg8[%c2_48, %c0_49, %c0_50], %98 {strides = array<i32>} : memref<4x8x1xf32, #tpu.memory_space<vmem>>, vector<1x8x1xf32>,
    %c2_51 = arith.constant 2 : index
    %c0_52 = arith.constant 0 : index
    %c0_53 = arith.constant 0 : index
    %99 = vector.load %arg7[%c2_51, %c0_52, %c0_53] : memref<4x8x1xf32, #tpu.memory_space<vmem>>, vector<1x8x1xf32>
    %100 = vector.shape_cast %99 : vector<1x8x1xf32> to vector<8x1xf32>
    %101 = vector.shape_cast %82 : vector<8x1xf32> to vector<1x8x1xf32>
    tpu.vector_store %arg7[%c2_51, %c0_52, %c0_53], %101 {strides = array<i32>} : memref<4x8x1xf32, #tpu.memory_space<vmem>>, vector<1x8x1xf32>,
    %102 = vector.extract_strided_slice %7 {offsets = [0, 64], sizes = [8, 32], strides = [1, 1]} : vector<8x128xbf16> to vector<8x32xbf16>
    %cst_54 = arith.constant dense<0.000000e+00> : vector<8x32xf32>
    %103 = tpu.matmul %88, %102, %cst_54 {dimension_numbers = #tpu.dot_dimension_numbers<[1], [0], [0], [1], [0, 0, 1, 1], [], []>} : vector<8x8xbf16>, vector<8x32xbf16>, vector<8x32xf32> -> vector<8x32xf32>
    %104 = vector.extract_strided_slice %8 {offsets = [0, 64], sizes = [8, 32], strides = [1, 1]} : vector<8x128xf32> to vector<8x32xf32>
    %105 = vector.broadcast %84 : vector<8x1xf32> to vector<8x32xf32>
    %106 = arith.mulf %105, %104 : vector<8x32xf32>
    %107 = arith.addf %106, %103 : vector<8x32xf32>
    %108 = vector.extract_strided_slice %3 {offsets = [0, 96], sizes = [8, 32], strides = [1, 1]} : vector<8x128xbf16> to vector<8x32xbf16>
    %109 = vector.extract_strided_slice %5 {offsets = [96, 0], sizes = [32, 8], strides = [1, 1]} : vector<128x8xbf16> to vector<32x8xbf16>
    %cst_55 = arith.constant dense<0.000000e+00> : vector<8x8xf32>
    %110 = tpu.matmul %108, %109, %cst_55 {dimension_numbers = #tpu.dot_dimension_numbers<[1], [0], [0], [1], [0, 0, 1, 1], [], []>} : vector<8x32xbf16>, vector<32x8xbf16>, vector<8x8xf32> -> vector<8x8xf32>
    %c3 = arith.constant 3 : index
    %c0_56 = arith.constant 0 : index
    %c0_57 = arith.constant 0 : index
    %111 = vector.load %arg7[%c3, %c0_56, %c0_57] : memref<4x8x1xf32, #tpu.memory_space<vmem>>, vector<1x8x1xf32>
    %112 = vector.shape_cast %111 : vector<1x8x1xf32> to vector<8x1xf32>
    %cst_58 = arith.constant dense<0xFF800000> : vector<8xf32>
    %113 = vector.multi_reduction <maximumf>, %110, %cst_58 [1] : vector<8x8xf32> to vector<8xf32>
    %114 = vector.shape_cast %113 : vector<8xf32> to vector<8x1xf32>
    %115 = arith.maximumf %112, %114 : vector<8x1xf32>
    %116 = arith.subf %112, %115 : vector<8x1xf32>
    %117 = math.exp %116 : vector<8x1xf32>
    %118 = vector.broadcast %115 : vector<8x1xf32> to vector<8x8xf32>
    %119 = arith.subf %110, %118 : vector<8x8xf32>
    %120 = arith.truncf %119 : vector<8x8xf32> to vector<8x8xbf16>
    %121 = math.exp %120 : vector<8x8xbf16>
    %c3_59 = arith.constant 3 : index
    %c0_60 = arith.constant 0 : index
    %c0_61 = arith.constant 0 : index
    %122 = vector.load %arg8[%c3_59, %c0_60, %c0_61] : memref<4x8x1xf32, #tpu.memory_space<vmem>>, vector<1x8x1xf32>
    %123 = vector.shape_cast %122 : vector<1x8x1xf32> to vector<8x1xf32>
    %124 = arith.mulf %117, %123 : vector<8x1xf32>
    %125 = arith.extf %121 : vector<8x8xbf16> to vector<8x8xf32>
    %cst_62 = arith.constant dense<0.000000e+00> : vector<8xf32>
    %126 = vector.multi_reduction <add>, %125, %cst_62 [1] : vector<8x8xf32> to vector<8xf32>
    %127 = vector.shape_cast %126 : vector<8xf32> to vector<8x1xf32>
    %128 = arith.addf %124, %127 : vector<8x1xf32>
    %c3_63 = arith.constant 3 : index
    %c0_64 = arith.constant 0 : index
    %c0_65 = arith.constant 0 : index
    %129 = vector.load %arg8[%c3_63, %c0_64, %c0_65] : memref<4x8x1xf32, #tpu.memory_space<vmem>>, vector<1x8x1xf32>
    %130 = vector.shape_cast %129 : vector<1x8x1xf32> to vector<8x1xf32>
    %131 = vector.shape_cast %128 : vector<8x1xf32> to vector<1x8x1xf32>
    tpu.vector_store %arg8[%c3_63, %c0_64, %c0_65], %131 {strides = array<i32>} : memref<4x8x1xf32, #tpu.memory_space<vmem>>, vector<1x8x1xf32>,
    %c3_66 = arith.constant 3 : index
    %c0_67 = arith.constant 0 : index
    %c0_68 = arith.constant 0 : index
    %132 = vector.load %arg7[%c3_66, %c0_67, %c0_68] : memref<4x8x1xf32, #tpu.memory_space<vmem>>, vector<1x8x1xf32>
    %133 = vector.shape_cast %132 : vector<1x8x1xf32> to vector<8x1xf32>
    %134 = vector.shape_cast %115 : vector<8x1xf32> to vector<1x8x1xf32>
    tpu.vector_store %arg7[%c3_66, %c0_67, %c0_68], %134 {strides = array<i32>} : memref<4x8x1xf32, #tpu.memory_space<vmem>>, vector<1x8x1xf32>,
    %135 = vector.extract_strided_slice %7 {offsets = [0, 96], sizes = [8, 32], strides = [1, 1]} : vector<8x128xbf16> to vector<8x32xbf16>
    %cst_69 = arith.constant dense<0.000000e+00> : vector<8x32xf32>
    %136 = tpu.matmul %121, %135, %cst_69 {dimension_numbers = #tpu.dot_dimension_numbers<[1], [0], [0], [1], [0, 0, 1, 1], [], []>} : vector<8x8xbf16>, vector<8x32xbf16>, vector<8x32xf32> -> vector<8x32xf32>
    %137 = vector.extract_strided_slice %8 {offsets = [0, 96], sizes = [8, 32], strides = [1, 1]} : vector<8x128xf32> to vector<8x32xf32>
    %138 = vector.broadcast %117 : vector<8x1xf32> to vector<8x32xf32>
    %139 = arith.mulf %138, %137 : vector<8x32xf32>
    %140 = arith.addf %139, %136 : vector<8x32xf32>
    %141 = tpu.concatenate %41, %74, %107, %140 in 1 : vector<8x32xf32>, vector<8x32xf32>, vector<8x32xf32>, vector<8x32xf32> -> vector<8x128xf32>
    %c0_70 = arith.constant 0 : index
    %c0_71 = arith.constant 0 : index
    %142 = vector.load %arg9[%c0_70, %c0_71] : memref<8x128xf32, #tpu.memory_space<vmem>>, vector<8x128xf32>
    tpu.vector_store %arg9[%c0_70, %c0_71], %141 {strides = array<i32>} : memref<8x128xf32, #tpu.memory_space<vmem>>, vector<8x128xf32>,
    %c0_i32_72 = arith.constant 0 : i32
    %143 = arith.cmpi eq, %arg2, %c0_i32_72 : i32
    %144 = arith.extui %143 : i1 to i32
    %c0_i32_73 = arith.constant 0 : i32
    %145 = arith.cmpi ne, %144, %c0_i32_73 : i32
    scf.if %145 {
      %c0_74 = arith.constant 0 : index
      %c0_75 = arith.constant 0 : index
      %146 = vector.load %arg9[%c0_74, %c0_75] : memref<8x128xf32, #tpu.memory_space<vmem>>, vector<8x128xf32>
      %147 = vector.extract_strided_slice %146 {offsets = [0, 0], sizes = [8, 32], strides = [1, 1]} : vector<8x128xf32> to vector<8x32xf32>
      %c0_76 = arith.constant 0 : index
      %c0_77 = arith.constant 0 : index
      %c0_78 = arith.constant 0 : index
      %148 = vector.load %arg8[%c0_76, %c0_77, %c0_78] : memref<4x8x1xf32, #tpu.memory_space<vmem>>, vector<1x8x1xf32>
      %149 = vector.shape_cast %148 : vector<1x8x1xf32> to vector<8x1xf32>
      %cst_79 = arith.constant 1.000000e+00 : f32
      %150 = vector.broadcast %cst_79 : f32 to vector<8x1xf32>
      %151 = arith.divf %150, %149 : vector<8x1xf32>
      %152 = vector.broadcast %151 : vector<8x1xf32> to vector<8x32xf32>
      %153 = arith.mulf %147, %152 : vector<8x32xf32>
      %154 = vector.extract_strided_slice %146 {offsets = [0, 32], sizes = [8, 32], strides = [1, 1]} : vector<8x128xf32> to vector<8x32xf32>
      %c1_80 = arith.constant 1 : index
      %c0_81 = arith.constant 0 : index
      %c0_82 = arith.constant 0 : index
      %155 = vector.load %arg8[%c1_80, %c0_81, %c0_82] : memref<4x8x1xf32, #tpu.memory_space<vmem>>, vector<1x8x1xf32>
      %156 = vector.shape_cast %155 : vector<1x8x1xf32> to vector<8x1xf32>
      %cst_83 = arith.constant 1.000000e+00 : f32
      %157 = vector.broadcast %cst_83 : f32 to vector<8x1xf32>
      %158 = arith.divf %157, %156 : vector<8x1xf32>
      %159 = vector.broadcast %158 : vector<8x1xf32> to vector<8x32xf32>
      %160 = arith.mulf %154, %159 : vector<8x32xf32>
      %161 = vector.extract_strided_slice %146 {offsets = [0, 64], sizes = [8, 32], strides = [1, 1]} : vector<8x128xf32> to vector<8x32xf32>
      %c2_84 = arith.constant 2 : index
      %c0_85 = arith.constant 0 : index
      %c0_86 = arith.constant 0 : index
      %162 = vector.load %arg8[%c2_84, %c0_85, %c0_86] : memref<4x8x1xf32, #tpu.memory_space<vmem>>, vector<1x8x1xf32>
      %163 = vector.shape_cast %162 : vector<1x8x1xf32> to vector<8x1xf32>
      %cst_87 = arith.constant 1.000000e+00 : f32
      %164 = vector.broadcast %cst_87 : f32 to vector<8x1xf32>
      %165 = arith.divf %164, %163 : vector<8x1xf32>
      %166 = vector.broadcast %165 : vector<8x1xf32> to vector<8x32xf32>
      %167 = arith.mulf %161, %166 : vector<8x32xf32>
      %168 = vector.extract_strided_slice %146 {offsets = [0, 96], sizes = [8, 32], strides = [1, 1]} : vector<8x128xf32> to vector<8x32xf32>
      %c3_88 = arith.constant 3 : index
      %c0_89 = arith.constant 0 : index
      %c0_90 = arith.constant 0 : index
      %169 = vector.load %arg8[%c3_88, %c0_89, %c0_90] : memref<4x8x1xf32, #tpu.memory_space<vmem>>, vector<1x8x1xf32>
      %170 = vector.shape_cast %169 : vector<1x8x1xf32> to vector<8x1xf32>
      %cst_91 = arith.constant 1.000000e+00 : f32
      %171 = vector.broadcast %cst_91 : f32 to vector<8x1xf32>
      %172 = arith.divf %171, %170 : vector<8x1xf32>
      %173 = vector.broadcast %172 : vector<8x1xf32> to vector<8x32xf32>
      %174 = arith.mulf %168, %173 : vector<8x32xf32>
      %175 = tpu.concatenate %153, %160, %167, %174 in 1 : vector<8x32xf32>, vector<8x32xf32>, vector<8x32xf32>, vector<8x32xf32> -> vector<8x128xf32>
      %c0_92 = arith.constant 0 : index
      %c0_93 = arith.constant 0 : index
      %c0_94 = arith.constant 0 : index
      %176 = vector.load %arg6[%c0_92, %c0_93, %c0_94] : memref<1x8x128xf32, #tpu.memory_space<vmem>>, vector<1x8x128xf32>
      %177 = vector.shape_cast %176 : vector<1x8x128xf32> to vector<8x128xf32>
      %178 = vector.shape_cast %175 : vector<8x128xf32> to vector<1x8x128xf32>
      tpu.vector_store %arg6[%c0_92, %c0_93, %c0_94], %178 {strides = array<i32>} : memref<1x8x128xf32, #tpu.memory_space<vmem>>, vector<1x8x128xf32>,
    } else {
    }
    return
  }
  func.func @transform_0(%arg0: i32, %arg1: i32, %arg2: i32) -> (i32, i32, i32) {
    %c0_i32 = arith.constant 0 : i32
    %c0_i32_0 = arith.constant 0 : i32
    return %arg0, %arg1, %c0_i32 : i32, i32, i32
  }
  func.func @transform_1(%arg0: i32, %arg1: i32, %arg2: i32) -> (i32, i32, i32) {
    %c0_i32 = arith.constant 0 : i32
    %c0_i32_0 = arith.constant 0 : i32
    return %arg0, %c0_i32, %arg2 : i32, i32, i32
  }
  func.func @transform_2(%arg0: i32, %arg1: i32, %arg2: i32) -> (i32, i32, i32) {
    %c0_i32 = arith.constant 0 : i32
    %c0_i32_0 = arith.constant 0 : i32
    return %arg0, %arg2, %c0_i32 : i32, i32, i32
  }
  func.func @transform_3(%arg0: i32, %arg1: i32, %arg2: i32) -> (i32, i32, i32) {
    %c0_i32 = arith.constant 0 : i32
    %c0_i32_0 = arith.constant 0 : i32
    return %arg0, %arg1, %c0_i32 : i32, i32, i32
  }
}

</mosaic_0001>

<bundles_post_ra>
// kernel: tpu_custom_call.1
= control target key start
LH: loop header
LB: loop body
LE: loop exit
PB: predicated region body
PF: predicated region fallthrough
CT: control target
= control target key end

     0   :  { %8 = vsyncpa [#allocation7], 0  ;;  %s1603_s0 = inlined_call_operand.vmem [shape: bf16[2,8,128], index: 0, kind: input, shape index: {}]   ;;  %s1604_s1 = inlined_call_operand.vmem [shape: bf16[2,128,8], index: 1, kind: input, shape index: {}]   ;;  %s1605_s2 = inlined_call_operand.vmem [shape: bf16[2,8,128], index: 2, kind: input, shape index: {}]   ;;  %s1606_s3 = inlined_call_operand.hbm [shape: f32[2,8,128], index: 3, kind: output, shape index: {}]  }
   0x1   :  { %10 = vsyncpa [#allocation7 + $0x1], 0  ;;  %s1359_s12 = smov 0   ;;  %s1361_s13 = smov 0  }
   0x2   :  { %s1363_s14 = smov 0   ;;  %s1365_s15 = smov 0  }
   0x3   :  { %s1367_s16 = smov 0   ;;  %s1369_s17 = smov 0  }
   0x4 LB: > { %s1047_s18 = sadd.s32 4294967295, %s1329_s17   ;;  %s1048_s19 = sadd.s32 4294967294, %s1329_s17   ;;  %s1329_s17 = sphi %s1369_s17, %s16_s17   ;;  %s1325_s16 = sphi %s1367_s16, %s1613_s16   ;;  %s1321_s15 = sphi %s1365_s15, %s1612_s15   ;;  %s1317_s14 = sphi %s1363_s14, %s1611_s14   ;;  %s1313_s13 = sphi %s1361_s13, %s1610_s13   ;;  %s1309_s12 = sphi %s1359_s12, %s1609_s12  }
   0x5   : > { %s35_s20 = sadd.s32 1, %s1325_s16  ;;  %s128_s21 = sadd.s32 1, %s1317_s14 }
   0x6   : > { %p37_p0 = scmp.ge.s32.totalorder %s35_s20, 2  ;;  %p138_p1 = scmp.ne.s32.totalorder %s1317_s14, %s1313_s13 }
   0x7   : > { %p139_p2 = scmp.eq.s32.totalorder %s1047_s18, 1  ;;  %p144_p3 = scmp.ne.s32.totalorder %s1313_s13, %s1309_s12 }
   0x8   : > { %s1615_s20 = smov (%p37_p0, %s35_s20), 0  ;;  %p145_p5 = scmp.eq.s32.totalorder %s1048_s19, 1 }
   0x9   : > { %p1399_p4 = por %p139_p2, %p138_p1  ;;  %s123_s23 = ssub.s32 %s1325_s16, %s1615_s20 }
   0xa   : > { %p1051_p6 = scmp.ge.s32.totalorder %s1329_s17, 1  ;;  %p126_p7 = scmp.eq.s32.totalorder %s123_s23, 0 }
   0xb   : > { %p1406_p8 = por %p145_p5, %p144_p3  ;;  %p194_p9 = scmp.lt.s32.totalorder %s1329_s17, 3 }
   0xc   : > { %s1412_s25 = scalar_select %p126_p7, %s1317_s14, %s128_s21  }
   0xd   : > { %p195_p10 = pnand %p1051_p6, %p194_p9 }
   0xe   : > { %p235_p11 = scmp.lt.s32.totalorder (!%p195_p10), %s1321_s15, 1  ;;  %s1335_s8 = smov (!%p195_p10), 96  }
   0xf   : > { %198 = sbr.rel (%p195_p10) target bundleno = 1358 (0x54e), region = 32  ;;  %s1336_s9 = smov (!%p195_p10), 64  }
  0x10   : > { %s1337_s10 = smov (!%p195_p10), 32   ;;  %s232_s21 = sand.u32 (!%p195_p10), 1, %s1313_s13  }
  0x11   : > { %s1052_s23 = sshll.u32 (!%p195_p10), %s232_s21, 3  ;;  %s926_s5 = scalar_lea.sflag (!%p195_p10), [#allocation7], %s232_s21 }
  0x14   : > { %v1331_v0 = vmov 0.0   ;;  %vm1332_vm0 = vmmov 0   ;;  %s1419_s26 = scalar_select %p235_p11, %s1321_s15, 1  ;;  %vm307_vm1 = vcmask 261120   ;;  %vm263_vm2 = vcmask 7168  }
  0x15   : > { %1100 = vmatprep.subr.bf16.mxu0 %v1331_v0  ;;  %1104 = vmatprep.mubr.msk.bf16.mxu0 %vm1332_vm0, %v1331_v0  ;;  %v1333_v6 = vmov -inf   ;;  %268 = vst.msk [vmem:[#allocation3] sm:$0xff] %vm263_vm2, %v1331_v0  ;;  %269 = vst.msk [vmem:[#allocation3 + $0x8] sm:$0xff] %vm263_vm2, %v1331_v0  ;;  %vm352_vm3 = vcmask 64512   ;;  %v1334_v12 = vmov 0   ;;  %vm383_vm4 = vcmask 1043456  }
  0x16   : > { %1108 = vmatprep.subr.bf16.mxu1 %v1331_v0  ;;  %1110 = vmatprep.mubr.msk.bf16.mxu1 %vm1332_vm0, %v1331_v0  ;;  %s1079_s27 = sshll.u32 %s1419_s26, 6  ;;  %s1053_s28 = sshll.u32 %s1419_s26, 2  ;;  %264 = vst.msk [vmem:[#allocation2] sm:$0xff] %vm263_vm2, %v1333_v6  ;;  %265 = vst.msk [vmem:[#allocation2 + $0x8] sm:$0xff] %vm263_vm2, %v1333_v6  ;;  %vm876_vm5 = vcmask 523264   ;;  %vm878_vm6 = vcmask 785408  }
  0x17   : > { %s1429_s4 = scalar_lea.vmem %s1604_s1, %s1079_s27  ;;  %s241_s7 = scalar_lea.vmem %s1603_s0, %s1053_s28  ;;  %266 = vst.msk [vmem:[#allocation2 + $0x10] sm:$0xff] %vm263_vm2, %v1333_v6  ;;  %267 = vst.msk [vmem:[#allocation2 + $0x18] sm:$0xff] %vm263_vm2, %v1333_v6  ;;  %1218 = vset.pattern.permute.xlu0 %v1334_v12  ;;  %1219 = vset.pattern.permute.xlu1 %v1334_v12 }
  0x18   : > { %v1220_v1 = vld [vmem:[%s1429_s4 + $0x8] sm:$0xff]   ;;  %v1221_v2 = vld [vmem:[%s1429_s4] sm:$0xff]   ;;  %270 = vst.msk [vmem:[#allocation3 + $0x10] sm:$0xff] %vm263_vm2, %v1331_v0  ;;  %271 = vst.msk [vmem:[#allocation3 + $0x18] sm:$0xff] %vm263_vm2, %v1331_v0  ;;  %s256_s19 = scalar_lea.vmem %s1605_s2, %s1053_s28  ;;  %s1076_s26 = sshll.u32 %s1321_s15, 7 }
  0x19   : > { %1101 = vmatpush3.bf16.msra.mxu0 %v1220_v1  ;;  %v273_v3 = vld [vmem:[%s241_s7] sm:$0xf]  ;;  %v1223_v24 = vld [vmem:[%s1429_s4 + $0x18] sm:$0xff]   ;;  %v1224_v26 = vld [vmem:[%s1429_s4 + $0x10] sm:$0xff]   ;;  %s234_s27 = scalar_lea.vmem [#allocation6], %s1052_s23  ;;  %s1338_s15 = smov [#allocation6]  }
  0x1a   : > { %1102 = vmatprep.subr.bf16.mxu0 %v1331_v0  ;;  %v274_v4 = vmul.bf16 1043676725, %v273_v3  ;;  %v293_v18 = vld [vmem:[%s256_s19] sm:$0xf]  ;;  %v1225_v28 = vld [vmem:[%s1429_s4 + $0x28] sm:$0xff]   ;;  %v1227_v31 = vld [vmem:[%s1429_s4 + $0x38] sm:$0xff]  }
  0x1b   : > { %v385_v19 = vsel %vm383_vm4, %v293_v18, 0  ;;  %v1226_v29 = vld [vmem:[%s1429_s4 + $0x20] sm:$0xff]   ;;  %v1228_v32 = vld [vmem:[%s1429_s4 + $0x30] sm:$0xff]   ;;  %v1065_v53 = vcombine.low %v293_v18, %v293_v18  ;;  %s940_s28 = sshll.u32 %s234_s27, 4  ;;  %s1562_s4 = scalar_lea.hbm %s1606_s3, %s1076_s26  ;;  %s941_s28 = int_to_ptr.vmem [resolvable:$true] %s940_s28 }
  0x1c   : > { %275 = vst [vmem:[#allocation5] sm:$0xf] %v274_v4  ;;  %1109 = vmatpush3.bf16.msra.mxu1 %v385_v19  ;;  %s1253_s6 = scalar_lea.vmem %s941_s28, 128  ;;  %s1257_s7 = sshll.u32 %s1338_s15, 4  ;;  %s1258_s7 = int_to_ptr.vmem [resolvable:$false] %s1257_s7 }
  0x1d   : > { %1103 = vmatpush3.bf16.msra.mxu0 %v1221_v2  ;;  %v1459_v14 = vld [vmem:[#allocation2] sm:$0xff]  ;;  %1114 = vmatprep.subr.bf16.mxu1 %v1331_v0  ;;  %v1506_v54 = vld [vmem:[#allocation2 + $0x8] sm:$0xff]  ;;  %p1254_p12 = scmp.ne.s32.totalorder %s941_s28, %s1253_s6  ;;  %p1260_p1 = scmp.lt.s32.totalorder %s941_s28, %s1258_s7 }
  0x1e   : > { %1122 = vmatprep.subr.bf16.mxu0 %v1331_v0  ;;  %v1516_v58 = vld [vmem:[#allocation2 + $0x10] sm:$0xff]  ;;  %v788_v62 = vld [vmem:[#allocation2 + $0x18] sm:$0xff] }
  0x1f   : > { %p1255_p13 = pnand %p1254_p12, %p1399_p4 }
  0x21   : > { %p1256_p0 = pneg %p1255_p13 }
  0x23   : > { %v276_v5 = vld [vmem:[#allocation5] sm:$0xf] }
  0x24   : > { %1105 = vmatmul.mubr.msk.bf16.vlgmr.msra.gmra.mxu0 %vm307_vm1, %v276_v5  ;;  %v1061_v13 = vcombine.low %v276_v5, %v276_v5 }
  0x25   : > { %1124 = vmatprep.mubr.msk.bf16.mxu0 %vm1332_vm0, %v1331_v0 }
  0x26   : > { %437 = vrot.lane.b32.xlu1 %v1061_v13, %s1335_s8 }
  0x2a   : > { %585 = vrot.lane.b32.xlu1 %v1061_v13, %s1336_s9 }
  0x2e   : > { %730 = vrot.lane.b32.xlu1 %v1061_v13, %s1337_s10 }
  0x98   : > { %v438_v27 = vpop.permute.xlu1 %437 }
  0x9c   : > { %v586_v30 = vpop.permute.xlu1 %585 }
  0xa0   : > { %v731_v33 = vpop.permute.xlu1 %730 }
  0xe4   : > { %v345_v7 = vpop.f32.mrf.mxu0 }
  0xe5   : > { %v353_v8 = vsel %vm352_vm3, %v345_v7, -inf }
  0xe6   : > { %354 = vmax.xlane.f32.xlu0 %v353_v8  ;;  %v1106_v9 = vpop.f32.mrf.mxu0 }
  0xe8   : > { %v348_v10 = vpop.f32.mrf.mxu0 }
  0xea   : > { %v1107_v11 = vpop.f32.mrf.mxu0 }
 0x16f   : > { %v355_v15 = vpop.xlane.xlu0 %354 }
 0x170   : > { %v1462_v16 = vmax.f32 %v1459_v14, %v355_v15 }
 0x172   : > { %v357_v17 = vsub.f32 %v1459_v14, %v1462_v16  ;;  %379 = vst.msk [vmem:[#allocation2] sm:$0xff] %vm263_vm2, %v1462_v16  ;;  %362 = vperm.xlu0 %1218, %v1462_v16  }
 0x1ed   : > { %v363_v20 = vpop.permute.xlu0 %362 }
 0x1ee   : > { %v365_v21 = vsub.f32 %v345_v7, %v363_v20 }
 0x1f0   : > { %v366_v22 = vpack.c.bf16 %v365_v21, %v365_v21 }
 0x1f2   : > { %v368_v23 = vmul.bf16 1069105081, %v366_v22 }
 0x1f4   : > { %1229 = vpow.bf16 %v368_v23 }
 0x202   : > { %v1477_v25 = vpop.eup %1229 }
 0x203   : > { %1111 = vmatmul.mubr.msk.bf16.vlgmr.msra.gmra.mxu1 %vm352_vm3, %v1477_v25  ;;  %v372_v3 = vunpack.c.l.bf16 %v1477_v25 }
 0x204   : > { %1115 = vmatpush3.bf16.msra.mxu1 %v1223_v24  ;;  %1118 = vmatprep.mubr.msk.bf16.mxu1 %vm1332_vm0, %v1331_v0 }
 0x205   : > { %1116 = vmatprep.subr.bf16.mxu1 %v1331_v0  ;;  %v373_v4 = vsel %vm352_vm3, %v372_v3, 0.0 }
 0x208   : > { %1117 = vmatpush3.bf16.msra.mxu1 %v1224_v26 }
 0x209   : > { %1128 = vmatprep.subr.bf16.mxu1 %v1331_v0 }
 0x20b   : > { %1119 = vmatmul.mubr.msk.bf16.vlgmr.msra.gmra.mxu1 %vm307_vm1, %v438_v27 }
 0x20c   : > { %1129 = vmatpush3.bf16.msra.mxu1 %v1225_v28  ;;  %1132 = vmatprep.mubr.msk.bf16.mxu1 %vm1332_vm0, %v1331_v0 }
 0x20d   : > { %1130 = vmatprep.subr.bf16.mxu1 %v1331_v0 }
 0x210   : > { %1131 = vmatpush3.bf16.msra.mxu1 %v1226_v29  ;;  %v358_v29 = vmul.f32 1.442695, %v357_v17 }
 0x211   : > { %1142 = vmatprep.subr.bf16.mxu1 %v1331_v0 }
 0x213   : > { %1133 = vmatmul.mubr.msk.bf16.vlgmr.msra.gmra.mxu1 %vm307_vm1, %v586_v30 }
 0x214   : > { %1143 = vmatpush3.bf16.msra.mxu1 %v1227_v31  ;;  %1146 = vmatprep.mubr.msk.bf16.mxu1 %vm1332_vm0, %v1331_v0 }
 0x215   : > { %1144 = vmatprep.subr.bf16.mxu1 %v1331_v0 }
 0x218   : > { %1145 = vmatpush3.bf16.msra.mxu1 %v1228_v32 }
 0x21b   : > { %1147 = vmatmul.mubr.msk.bf16.vlgmr.msra.gmra.mxu1 %vm307_vm1, %v731_v33 }
 0x2c3   : > { %v1500_v34 = vpop.f32.mrf.mxu1 }
 0x2c5   : > { %v1112_v35 = vpop.f32.mrf.mxu1 }
 0x2c7   : > { %v424_v36 = vpop.f32.mrf.mxu1 }
 0x2c9   : > { %v1113_v37 = vpop.f32.mrf.mxu1 }
 0x2cb   : > { %v488_v38 = vpop.f32.mrf.mxu1 }
 0x2cc   : > { %v496_v39 = vsel %vm352_vm3, %v488_v38, -inf }
 0x2cd   : > { %497 = vmax.xlane.f32.xlu1 %v496_v39  ;;  %v1120_v40 = vpop.f32.mrf.mxu1 }
 0x2ce   : > { %v370_v40 = vld [vmem:[#allocation3] sm:$0xff] }
 0x2cf   : > { %v491_v41 = vpop.f32.mrf.mxu1 }
 0x2d1   : > { %v1121_v42 = vpop.f32.mrf.mxu1 }
 0x2d3   : > { %v636_v43 = vpop.f32.mrf.mxu1 }
 0x2d4   : > { %v644_v44 = vsel %vm352_vm3, %v636_v43, -inf }
 0x2d5   : > { %645 = vmax.xlane.f32.xlu0 %v644_v44  ;;  %v1134_v45 = vpop.f32.mrf.mxu1 }
 0x2d7   : > { %v639_v46 = vpop.f32.mrf.mxu1 }
 0x2d8   : > { %v514_v46 = vld [vmem:[#allocation3 + $0x8] sm:$0xff] }
 0x2d9   : > { %v1135_v47 = vpop.f32.mrf.mxu1 }
 0x2db   : > { %v781_v48 = vpop.f32.mrf.mxu1 }
 0x2dc   : > { %v789_v49 = vsel %vm352_vm3, %v781_v48, -inf }
 0x2dd   : > { %790 = vmax.xlane.f32.xlu1 %v789_v49  ;;  %v1148_v50 = vpop.f32.mrf.mxu1 }
 0x2de   : > { %v662_v50 = vld [vmem:[#allocation3 + $0x10] sm:$0xff] }
 0x2df   : > { %v784_v51 = vpop.f32.mrf.mxu1 }
 0x2e1   : > { %v1149_v52 = vpop.f32.mrf.mxu1 }
 0x2eb   : > { %671 = vrot.lane.b32.xlu0 %v1065_v53, %s1336_s9 }
 0x356   : > { %v498_v55 = vpop.xlane.xlu1 %497 }
 0x357   : > { %v1509_v56 = vmax.f32 %v1506_v54, %v498_v55  ;;  %v807_v55 = vld [vmem:[#allocation3 + $0x18] sm:$0xff] }
 0x359   : > { %v500_v57 = vsub.f32 %v1506_v54, %v1509_v56  ;;  %522 = vst.msk [vmem:[#allocation2 + $0x8] sm:$0xff] %vm263_vm2, %v1509_v56  ;;  %505 = vperm.xlu1 %1219, %v1509_v56  }
 0x35b   : > { %v501_v36 = vmul.f32 1.442695, %v500_v57 }
 0x35e   : > { %v646_v59 = vpop.xlane.xlu0 %645 }
 0x35f   : > { %v647_v60 = vmax.f32 %v1516_v58, %v646_v59 }
 0x361   : > { %v648_v61 = vsub.f32 %v1516_v58, %v647_v60  ;;  %670 = vst.msk [vmem:[#allocation2 + $0x10] sm:$0xff] %vm263_vm2, %v647_v60  ;;  %653 = vperm.xlu1 %1219, %v647_v60  }
 0x362   : > { %v672_v20 = vpop.permute.xlu0 %671 }
 0x363   : > { %v677_v25 = vsel %vm383_vm4, %v672_v20, 0  ;;  %v649_v14 = vmul.f32 1.442695, %v648_v61 }
 0x366   : > { %v791_v63 = vpop.xlane.xlu1 %790 }
 0x367   : > { %v792_v1 = vmax.f32 %v788_v62, %v791_v63 }
 0x369   : > { %v793_v2 = vsub.f32 %v788_v62, %v792_v1  ;;  %815 = vst.msk [vmem:[#allocation2 + $0x18] sm:$0xff] %vm263_vm2, %v792_v1  ;;  %798 = vperm.xlu1 %1219, %v792_v1  }
 0x36b   : > { %v794_v17 = vmul.f32 1.442695, %v793_v2 }
 0x36d   : > { %526 = vrot.lane.b32.xlu1 %v1065_v53, %s1335_s8 }
 0x371   : > { %816 = vrot.lane.b32.xlu1 %v1065_v53, %s1337_s10 }
 0x395   : > { %374 = vadd.xlane.f32.xlu1 %v373_v4 }
 0x3d4   : > { %v506_v5 = vpop.permute.xlu1 %505 }
 0x3d5   : > { %v508_v6 = vsub.f32 %v488_v38, %v506_v5 }
 0x3d7   : > { %v509_v7 = vpack.c.bf16 %v508_v6, %v508_v6 }
 0x3d9   : > { %v511_v8 = vmul.bf16 1069105081, %v509_v7 }
 0x3db   : > { %1231 = vpow.bf16 %v511_v8 }
 0x3dc   : > { %v654_v9 = vpop.permute.xlu1 %653 }
 0x3dd   : > { %v656_v10 = vsub.f32 %v636_v43, %v654_v9 }
 0x3df   : > { %v657_v11 = vpack.c.bf16 %v656_v10, %v656_v10 }
 0x3e1   : > { %v659_v12 = vmul.bf16 1069105081, %v657_v11 }
 0x3e3   : > { %1233 = vpow.bf16 %v659_v12 }
 0x3e4   : > { %v799_v13 = vpop.permute.xlu1 %798 }
 0x3e5   : > { %v801_v15 = vsub.f32 %v781_v48, %v799_v13 }
 0x3e7   : > { %v802_v18 = vpack.c.bf16 %v801_v15, %v801_v15 }
 0x3e8   : > { %v527_v19 = vpop.permute.xlu1 %526 }
 0x3e9   : > { %v1232_v21 = vpop.eup %1231  ;;  %v804_v22 = vmul.bf16 1069105081, %v802_v18  ;;  %v532_v23 = vsel %vm383_vm4, %v527_v19, 0 }
 0x3ea   : > { %1123 = vmatpush3.bf16.msra.mxu0 %v532_v23  ;;  %v516_v24 = vunpack.c.l.bf16 %v1232_v21 }
 0x3eb   : > { %1235 = vpow.bf16 %v804_v22  ;;  %1136 = vmatprep.subr.bf16.mxu0 %v1331_v0 }
 0x3ec   : > { %v517_v26 = vsel %vm352_vm3, %v516_v24, 0.0  ;;  %v817_v27 = vpop.permute.xlu1 %816  ;;  %1237 = vpow2.f32 %v358_v29 }
 0x3ed   : > { %518 = vadd.xlane.f32.xlu0 %v517_v26  ;;  %1125 = vmatmul.mubr.msk.bf16.vlgmr.msra.gmra.mxu0 %vm352_vm3, %v1232_v21  ;;  %v822_v31 = vsel %vm383_vm4, %v817_v27, 0  ;;  %1239 = vpow2.f32 %v501_v36 }
 0x3ee   : > { %1137 = vmatpush3.bf16.msra.mxu0 %v677_v25  ;;  %1138 = vmatprep.mubr.msk.bf16.mxu0 %vm1332_vm0, %v1331_v0  ;;  %1241 = vpow2.f32 %v649_v14 }
 0x3ef   : > { %1150 = vmatprep.subr.bf16.mxu0 %v1331_v0  ;;  %1243 = vpow2.f32 %v794_v17 }
 0x3f1   : > { %v1234_v28 = vpop.eup %1233 }
 0x3f2   : > { %v664_v30 = vunpack.c.l.bf16 %v1234_v28 }
 0x3f4   : > { %v665_v32 = vsel %vm352_vm3, %v664_v30, 0.0 }
 0x3f5   : > { %1139 = vmatmul.mubr.msk.bf16.vlgmr.msra.gmra.mxu0 %vm352_vm3, %v1234_v28  ;;  %666 = vadd.xlane.f32.xlu1 %v665_v32 }
 0x3f6   : > { %1151 = vmatpush3.bf16.msra.mxu0 %v822_v31  ;;  %1152 = vmatprep.mubr.msk.bf16.mxu0 %vm1332_vm0, %v1331_v0 }
 0x3f9   : > { %v1236_v33 = vpop.eup %1235 }
 0x3fa   : > { %v809_v35 = vunpack.c.l.bf16 %v1236_v33  ;;  %v1238_v16 = vpop.eup %1237 }
 0x3fb   : > { %v1240_v38 = vpop.eup %1239  ;;  %v371_v41 = vmul.f32 %v1238_v16, %v370_v40 }
 0x3fc   : > { %v810_v37 = vsel %vm352_vm3, %v809_v35, 0.0  ;;  %v1242_v39 = vpop.eup %1241  ;;  %v515_v47 = vmul.f32 %v1240_v38, %v514_v46 }
 0x3fd   : > { %1153 = vmatmul.mubr.msk.bf16.vlgmr.msra.gmra.mxu0 %vm352_vm3, %v1236_v33  ;;  %811 = vadd.xlane.f32.xlu1 %v810_v37  ;;  %v1244_v0 = vpop.eup %1243  ;;  %v663_v51 = vmul.f32 %v1242_v39, %v662_v50 }
 0x3fe   : > { %v808_v56 = vmul.f32 %v1244_v0, %v807_v55 }
 0x403   : > { %429 = vperm.xlu0 %1218, %v1238_v16  }
 0x40e   : > { %576 = vperm.xlu1 %1219, %v1240_v38  }
 0x412   : > { %721 = vperm.xlu1 %1219, %v1242_v39  }
 0x416   : > { %866 = vperm.xlu1 %1219, %v1244_v0  }
 0x41e   : > { %v375_v42 = vpop.xlane.xlu1 %374 }
 0x41f   : > { %v376_v43 = vadd.f32 %v375_v42, %v371_v41 }
 0x421   : > { %378 = vst.msk [vmem:[#allocation3] sm:$0xff] %vm263_vm2, %v376_v43 }
 0x428   : > { %v885_v44 = vld [vmem:[#allocation3] sm:$0xff] }
 0x429   : > { %1245 = vrcp.f32 %v885_v44 }
 0x436   : > { %v1246_v45 = vpop.eup %1245 }
 0x437   : > { %890 = vperm.xlu1 %1219, %v1246_v45  }
 0x476   : > { %v519_v48 = vpop.xlane.xlu0 %518 }
 0x477   : > { %v520_v49 = vadd.f32 %v519_v48, %v515_v47 }
 0x479   : > { %521 = vst.msk [vmem:[#allocation3 + $0x8] sm:$0xff] %vm263_vm2, %v520_v49 }
 0x47e   : > { %v667_v52 = vpop.xlane.xlu1 %666  ;;  %v430_v18 = vpop.permute.xlu0 %429 }
 0x47f   : > { %v668_v53 = vadd.f32 %v667_v52, %v663_v51  ;;  %v432_v23 = vmul.f32 0.0, %v430_v18 }
 0x480   : > { %v894_v54 = vld [vmem:[#allocation3 + $0x8] sm:$0xff] }
 0x481   : > { %669 = vst.msk [vmem:[#allocation3 + $0x10] sm:$0xff] %vm263_vm2, %v668_v53  ;;  %1247 = vrcp.f32 %v894_v54  ;;  %v433_v31 = vadd.f32 %v432_v23, %v1500_v34 }
 0x486   : > { %v812_v57 = vpop.xlane.xlu1 %811 }
 0x487   : > { %v813_v58 = vadd.f32 %v812_v57, %v808_v56 }
 0x488   : > { %v903_v60 = vld [vmem:[#allocation3 + $0x10] sm:$0xff] }
 0x489   : > { %814 = vst.msk [vmem:[#allocation3 + $0x18] sm:$0xff] %vm263_vm2, %v813_v58  ;;  %1249 = vrcp.f32 %v903_v60 }
 0x48a   : > { %v577_v13 = vpop.permute.xlu1 %576 }
 0x48b   : > { %v579_v24 = vmul.f32 0.0, %v577_v13 }
 0x48e   : > { %v1248_v59 = vpop.eup %1247  ;;  %v722_v15 = vpop.permute.xlu1 %721 }
 0x48f   : > { %899 = vperm.xlu0 %1218, %v1248_v59   ;;  %v724_v26 = vmul.f32 0.0, %v722_v15 }
 0x490   : > { %v912_v1 = vld [vmem:[#allocation3 + $0x18] sm:$0xff] }
 0x491   : > { %1251 = vrcp.f32 %v912_v1 }
 0x492   : > { %v867_v19 = vpop.permute.xlu1 %866 }
 0x493   : > { %v869_v27 = vmul.f32 0.0, %v867_v19 }
 0x496   : > { %v1250_v5 = vpop.eup %1249 }
 0x49e   : > { %v1252_v10 = vpop.eup %1251 }
 0x4ad   : > { %v568_v61 = vpop.f32.mrf.mxu0 }
 0x4ae   : > { %581 = vrot.lane.b32.xlu0 %v568_v61, %s1337_s10 }
 0x4af   : > { %v1126_v62 = vpop.f32.mrf.mxu0 }
 0x4b1   : > { %v571_v63 = vpop.f32.mrf.mxu0 }
 0x4b2   : > { %v891_v21 = vpop.permute.xlu1 %890 }
 0x4b3   : > { %v1127_v2 = vpop.f32.mrf.mxu0 }
 0x4b5   : > { %v713_v3 = vpop.f32.mrf.mxu0 }
 0x4b6   : > { %726 = vrot.lane.b32.xlu1 %v713_v3, %s1336_s9 }
 0x4b7   : > { %v1140_v4 = vpop.f32.mrf.mxu0 }
 0x4b9   : > { %v716_v6 = vpop.f32.mrf.mxu0 }
 0x4ba   : > { %908 = vperm.xlu1 %1219, %v1250_v5  }
 0x4bb   : > { %v1141_v7 = vpop.f32.mrf.mxu0 }
 0x4bd   : > { %v858_v8 = vpop.f32.mrf.mxu0 }
 0x4be   : > { %871 = vrot.lane.b32.xlu0 %v858_v8, %s1335_s8  ;;  %s1259_s8 = scalar_lea.vmem %s1258_s7, 256 }
 0x4bf   : > { %v1154_v9 = vpop.f32.mrf.mxu0  ;;  %p1261_p2 = scmp.lt.s32.totalorder %s1259_s8, %s1253_s6 }
 0x4c1   : > { %v861_v11 = vpop.f32.mrf.mxu0  ;;  %p1262_p3 = por %p1261_p2, %p1260_p1 }
 0x4c2   : > { %917 = vperm.xlu0 %1218, %v1252_v10  }
 0x4c3   : > { %v1155_v12 = vpop.f32.mrf.mxu0  ;;  %p1263_p5 = pnand %p1262_p3, %p1256_p0 }
 0x50a   : > { %v900_v20 = vpop.permute.xlu0 %899 }
 0x520   : > { %v582_v22 = vpop.permute.xlu0 %581 }
 0x521   : > { %v584_v28 = vadd.f32 %v582_v22, %v579_v24 }
 0x523   : > { %v875_v33 = vsel %vm307_vm1, %v433_v31, %v584_v28 }
 0x528   : > { %v727_v25 = vpop.permute.xlu1 %726 }
 0x529   : > { %v729_v29 = vadd.f32 %v727_v25, %v724_v26 }
 0x52b   : > { %v877_v35 = vsel %vm876_vm5, %v875_v33, %v729_v29 }
 0x530   : > { %v872_v30 = vpop.permute.xlu0 %871 }
 0x531   : > { %v874_v32 = vadd.f32 %v872_v30, %v869_v27 }
 0x533   : > { %v879_v36 = vsel %vm878_vm6, %v877_v35, %v874_v32 }
 0x534   : > { %v893_v14 = vmul.f32 %v891_v21, %v879_v36  ;;  %v902_v16 = vmul.f32 %v900_v20, %v879_v36 }
 0x535   : > { %v909_v37 = vpop.permute.xlu1 %908 }
 0x536   : > { %v911_v17 = vmul.f32 %v909_v37, %v879_v36  ;;  %v921_v38 = vsel %vm307_vm1, %v893_v14, %v902_v16 }
 0x538   : > { %v922_v0 = vsel %vm876_vm5, %v921_v38, %v911_v17 }
 0x53d   : > { %v918_v34 = vpop.permute.xlu0 %917 }
 0x53e   : > { %v920_v39 = vmul.f32 %v918_v34, %v879_v36 }
 0x540   : > { %v923_v40 = vsel %vm878_vm6, %v922_v0, %v920_v39 }
 0x541   : > { %924 = vst [vmem:[%s234_s27] sm:$0xff] %v923_v40 }
 0x542   : > { %1266 = shalt.err (!%p1263_p5)
}
 0x543   : > { %s1267_s9 = scalar_lea.hbm %s1562_s4, 128  ;;  %s1271_s18 = scalar_lea.hbm %s1606_s3, 256 }
 0x544   : > { %p1268_p6 = scmp.ne.s32.totalorder %s1562_s4, %s1267_s9  ;;  %p1272_p10 = scmp.lt.s32.totalorder %s1562_s4, %s1606_s3 }
 0x545   : > { %p1273_p11 = scmp.lt.s32.totalorder %s1271_s18, %s1267_s9 }
 0x546   : > { %p1269_p7 = pnand %p1268_p6, %p1399_p4 }
 0x547   : > { %p1274_p12 = por %p1273_p11, %p1272_p10 }
 0x548   : > { %p1270_p9 = pneg %p1269_p7 }
 0x54a   : > { %p1275_p13 = pnand %p1274_p12, %p1270_p9 }
 0x54c   : > { %1278 = shalt.err (!%p1275_p13)
}
 0x54d   : > { %1156 = dma.vmem_to_hbm [thread:$0]  (%p1399_p4), %s941_s28, 128, %s1562_s4, %s926_s5  }
 0x54e PF: > { %p1162_p0 = scmp.ge.s32.totalorder %s1329_s17, 2  ;;  %s952_s23 = sand.u32 1, %s1309_s12  }
 0x54f   : > { %s953_s26 = scalar_lea.sflag [#allocation7], %s952_s23 }
 0x550   : > { %p1159_p1 = pnand %p1162_p0, %p1406_p8 }
 0x552   : > { %p1160_p2 = pneg %p1159_p1 }
 0x554   : > { %1304 = dma.done.wait (%p1160_p2), %s953_s26, 128  }
 0x555   : > { %1306 = vsyncadd (%p1160_p2), %s953_s26, 4294967168  ;;  %s16_s17 = sadd.s32 1, %s1329_s17   ;;  %s1609_s12 = smov %s1313_s13 }
 0x556   : > { %p13_p3 = scmp.ge.s32.totalorder %s16_s17, 4   ;;  %s1610_s13 = smov %s1317_s14 }
 0x557   : > { %s1611_s14 = smov %s1412_s25  ;;  %s1612_s15 = smov %s1325_s16 }
 0x558   : > { %s1613_s16 = smov %s1615_s20  ;;  %15 = sbr.rel (!%p13_p3) target bundleno = 4 (0x4), region = 87 }
 0x55d   :  { %958 = vsyncpa [#allocation7], 1 }
 0x55e   :  { %960 = vsyncpa [#allocation7 + $0x1], 1 }

</bundles_post_ra>
